<compile_context>
chip_gen: v6e
topology: v6e:2x2x1
jax: 0.10.0
libtpu: 0.0.40
codegen_flags: <defaults>
</compile_context>

<pallas_src>
import math
import jax
import jax.numpy as jnp
from jax import lax
from jax.experimental import pallas as pl
from jax.experimental.pallas import tpu as pltpu


def _round_up(x, m):
    return (x + m - 1) // m * m


# --------------------- Generic tiled matmul + bias kernel -------------------
def matmul_bias_kernel(x_ref, w_ref, b_ref, o_ref, acc_ref):
    @pl.when(pl.program_id(2) == 0)
    def _():
        acc_ref[...] = jnp.zeros_like(acc_ref)

    acc_ref[...] += jnp.dot(x_ref[...], w_ref[...],
                            preferred_element_type=jnp.float32)

    @pl.when(pl.program_id(2) == pl.num_programs(2) - 1)
    def _():
        o_ref[...] = (acc_ref[...] + b_ref[...]).astype(o_ref.dtype)


def matmul_bias(x, w, b, out_dtype=jnp.float32, tm=256, tn=512, tk=512):
    """x: (M, K), w: (K, N), b: (N,) or (1, N) -> (M, N) in out_dtype."""
    M, K = x.shape
    _, N = w.shape
    tm = min(tm, _round_up(M, 8))
    tn = min(tn, _round_up(N, 128))
    tk = min(tk, _round_up(K, 128))
    Mp, Kp, Np = _round_up(M, tm), _round_up(K, tk), _round_up(N, tn)

    xp = jnp.pad(x, ((0, Mp - M), (0, Kp - K)))
    wp = jnp.pad(w, ((0, Kp - K), (0, Np - N)))
    bp = jnp.pad(jnp.asarray(b, jnp.float32).reshape(1, -1),
                 ((0, 0), (0, Np - N)))

    out = pl.pallas_call(
        matmul_bias_kernel,
        out_shape=jax.ShapeDtypeStruct((Mp, Np), out_dtype),
        grid_spec=pltpu.PrefetchScalarGridSpec(
            num_scalar_prefetch=0,
            grid=(Mp // tm, Np // tn, Kp // tk),
            in_specs=[
                pl.BlockSpec((tm, tk), lambda i, j, k: (i, k)),
                pl.BlockSpec((tk, tn), lambda i, j, k: (k, j)),
                pl.BlockSpec((1, tn), lambda i, j, k: (0, j)),
            ],
            out_specs=pl.BlockSpec((tm, tn), lambda i, j, k: (i, j)),
            scratch_shapes=[pltpu.VMEM((tm, tn), jnp.float32)],
        ),
        compiler_params=pltpu.CompilerParams(
            dimension_semantics=("parallel", "parallel", "arbitrary"),
            vmem_limit_bytes=64 * 1024 * 1024,
        ),
    )(xp, wp, bp)
    return out[:M, :N]


# --------------------------- LSTM recurrence kernel --------------------------
def lstm_kernel(xg_ref, whh_ref, out_ref, h_scr, c_scr):
    """Grid = (batch_shards [parallel], time_chunks [arbitrary]).

    xg_ref : (Tc, Bt, 4Hp) f32  -- precomputed X@W_ih^T + b (bias folded)
    whh_ref: (Hp, 4Hp)     bf16 -- recurrent weight, resident in VMEM
    out_ref: (Tc, Bt, Hp)  f32  -- hidden states
    h/c scratch persist across the time-chunk axis; re-initialized per shard.
    """
    @pl.when(pl.program_id(1) == 0)
    def _():
        h_scr[...] = jnp.zeros_like(h_scr)
        c_scr[...] = jnp.zeros_like(c_scr)

    whh = whh_ref[...]                       # hoisted: loaded once per chunk
    Hp = h_scr.shape[-1]
    Tc = xg_ref.shape[0]

    def step(t, carry):
        h, c = carry
        gates = xg_ref[t] + jnp.dot(h.astype(whh.dtype), whh,
                                    preferred_element_type=jnp.float32)
        # PyTorch gate order i, f, g, o; slices are 128-lane aligned (Hp % 128 == 0).
        i_g = jax.nn.sigmoid(gates[:, 0 * Hp:1 * Hp])
        f_g = jax.nn.sigmoid(gates[:, 1 * Hp:2 * Hp])
        g_g = jnp.tanh(gates[:, 2 * Hp:3 * Hp])
        o_g = jax.nn.sigmoid(gates[:, 3 * Hp:4 * Hp])
        c_new = f_g * c + i_g * g_g
        h_new = o_g * jnp.tanh(c_new)
        out_ref[t] = h_new
        return h_new, c_new

    h_f, c_f = lax.fori_loop(0, Tc, step, (h_scr[...], c_scr[...]),
                             unroll=(Tc <= 16))
    h_scr[...] = h_f
    c_scr[...] = c_f


def run_lstm(xg_tm, whh_t, *, batch_tile, time_chunk):
    """xg_tm: (Tpad, Bp, 4Hp) f32 precomputed input gates; returns (Tpad, Bp, Hp) f32."""
    Tpad, Bp, G4 = xg_tm.shape
    Hp = whh_t.shape[0]
    grid = (Bp // batch_tile, Tpad // time_chunk)
    return pl.pallas_call(
        lstm_kernel,
        out_shape=jax.ShapeDtypeStruct((Tpad, Bp, Hp), jnp.float32),
        grid_spec=pltpu.PrefetchScalarGridSpec(
            num_scalar_prefetch=0,
            grid=grid,
            in_specs=[
                pl.BlockSpec((time_chunk, batch_tile, G4), lambda b, c: (c, b, 0)),
                pl.BlockSpec((Hp, G4), lambda b, c: (0, 0)),
            ],
            out_specs=pl.BlockSpec((time_chunk, batch_tile, Hp),
                                   lambda b, c: (c, b, 0)),
            scratch_shapes=[
                pltpu.VMEM((batch_tile, Hp), jnp.float32),
                pltpu.VMEM((batch_tile, Hp), jnp.float32),
            ],
        ),
        compiler_params=pltpu.CompilerParams(
            # time axis MUST stay sequential (carried h/c); batch axis may be
            # sharded across TensorCores (v7x megacore).
            dimension_semantics=("parallel", "arbitrary"),
            vmem_limit_bytes=64 * 1024 * 1024,
        ),
    )(xg_tm, whh_t)


# ------------------------------- Full forward --------------------------------
def rnn_forward(params, features, captions, lengths, *, time_chunk=16):
    """
    features: (B, E) float32
    captions: (B, T) int32
    lengths:  python list of ints, sorted descending (pack_padded_sequence contract)
    returns:  (sum(lengths), vocab_size) float32 — same packed row order as PyTorch.
    """
    B, T = captions.shape
    Tp = T + 1
    E = features.shape[1]
    Hp = params["whh_t"].shape[0]

    # Embedding lookup + prepend image features (glue), like
    # torch.cat((features.unsqueeze(1), embeddings), 1).
    emb = jnp.take(params["embed"], captions, axis=0)                  # (B, T, E)
    inputs = jnp.concatenate([features[:, None, :], emb], axis=1)      # (B, Tp, E)

    # Pad batch to a sublane multiple and time to a chunk multiple (padding rows /
    # steps are never gathered, so results are unaffected).
    batch_tile = 128 if B > 128 else _round_up(B, 8)
    Bp = _round_up(B, batch_tile)
    Tpad = _round_up(Tp, time_chunk)
    inputs = jnp.pad(inputs, ((0, Bp - B), (0, Tpad - Tp), (0, 0)))
    inputs_tm = jnp.transpose(inputs, (1, 0, 2)).astype(jnp.bfloat16)  # (Tpad, Bp, E)

    # Hoisted input projection: one big bf16 matmul for ALL timesteps, bias folded.
    xg = matmul_bias(inputs_tm.reshape(Tpad * Bp, E),
                     params["wih_t"], params["lstm_b"],
                     out_dtype=jnp.float32)                            # (Tpad*Bp, 4Hp)
    xg = xg.reshape(Tpad, Bp, 4 * Hp)

    # Recurrence: only h @ W_hh on the serial path.
    hiddens_tm = run_lstm(xg, params["whh_t"],
                          batch_tile=batch_tile, time_chunk=time_chunk)  # (Tpad, Bp, Hp)

    # Emulate pack_padded_sequence(batch_first=True).data row order:
    # for t in 0..Tp-1: all batch items b with lengths[b] > t (lengths sorted desc).
    # TODO(synk): packed-row selection stays as plain-JAX gather glue (small vs. logits).
    t_idx, b_idx = [], []
    for t in range(Tp):
        for b in range(B):
            if lengths[b] > t:
                t_idx.append(t)
                b_idx.append(b)
    packed_h = hiddens_tm[jnp.array(t_idx), jnp.array(b_idx)]          # (N, Hp)

    # Final Linear over packed rows (tiled, parallel M/N axes).
    return matmul_bias(packed_h.astype(jnp.bfloat16),
                       params["lin_w_t"], params["lin_b"],
                       out_dtype=jnp.float32)


# ----------------------------- Params --------------------------------------
def init_params(key, embed_size, hidden_size, vocab_size):
    k = jax.random.split(key, 7)
    kr = 1.0 / math.sqrt(hidden_size)
    H = hidden_size
    Hp = _round_up(H, 128)      # pad hidden per-gate so gate slices are lane-aligned

    embed = jax.random.normal(k[0], (vocab_size, embed_size), jnp.float32)
    w_ih = jax.random.uniform(k[1], (4 * H, embed_size), jnp.float32, -kr, kr)
    w_hh = jax.random.uniform(k[2], (4 * H, H), jnp.float32, -kr, kr)
    b_ih = jax.random.uniform(k[3], (4 * H,), jnp.float32, -kr, kr)
    b_hh = jax.random.uniform(k[4], (4 * H,), jnp.float32, -kr, kr)
    lin_w = jax.random.uniform(k[5], (vocab_size, H), jnp.float32, -kr, kr)
    lin_b = jax.random.uniform(k[6], (vocab_size,), jnp.float32, -kr, kr)

    def pad_gate_out(w):  # (4H, in) -> (4Hp, in), zero-padded per gate
        return jnp.pad(w.reshape(4, H, -1),
                       ((0, 0), (0, Hp - H), (0, 0))).reshape(4 * Hp, -1)

    wih_p = pad_gate_out(w_ih)                                    # (4Hp, E)
    whh_p = jnp.pad(pad_gate_out(w_hh), ((0, 0), (0, Hp - H)))    # (4Hp, Hp)
    b_p = jnp.pad((b_ih + b_hh).reshape(4, H),
                  ((0, 0), (0, Hp - H))).reshape(4 * Hp)          # (4Hp,)
    lin_w_p = jnp.pad(lin_w, ((0, 0), (0, Hp - H)))               # (V, Hp)

    return {
        "embed": embed,                               # (V, E) f32
        "wih_t": wih_p.T.astype(jnp.bfloat16),        # (E, 4Hp) bf16
        "whh_t": whh_p.T.astype(jnp.bfloat16),        # (Hp, 4Hp) bf16
        "lstm_b": b_p,                                # (4Hp,) f32, b_ih + b_hh folded
        "lin_w_t": lin_w_p.T.astype(jnp.bfloat16),    # (Hp, V) bf16
        "lin_b": lin_b,                               # (V,) f32
    }


# ------------------------------- Main ----------------------------------------
if __name__ == "__main__":
    embed_size, hidden_size, vocab_size = 32, 32, 64
    B, T = 2, 8
    lengths = [9, 7]   # includes the prepended feature step; sorted descending

    key = jax.random.PRNGKey(0)
    kp, kf, kc = jax.random.split(key, 3)
    params = init_params(kp, embed_size, hidden_size, vocab_size)
    features = jax.random.normal(kf, (B, embed_size), jnp.float32)
    captions = jax.random.randint(kc, (B, T), 0, vocab_size, jnp.int32)

    out = rnn_forward(params, features, captions, lengths)
    out = jax.block_until_ready(out)
    assert out.shape == (sum(lengths), vocab_size), out.shape
    assert bool(jnp.all(jnp.isfinite(out)))
    print("KERNEL_OK")
</pallas_src>

<mosaic_0001>
module attributes {stable_mosaic.version = 11 : i64} {
  func.func @matmul_bias_kernel(%arg0: i32, %arg1: i32, %arg2: i32, %arg3: memref<128x128xbf16, #tpu.memory_space<vmem>>, %arg4: memref<128x512xbf16, #tpu.memory_space<vmem>>, %arg5: memref<1x512xf32, #tpu.memory_space<vmem>>, %arg6: memref<128x512xf32, #tpu.memory_space<vmem>>, %arg7: memref<128x512xf32, #tpu.memory_space<vmem>>) attributes {dimension_semantics = [#tpu.dimension_semantics<parallel>, #tpu.dimension_semantics<parallel>, #tpu.dimension_semantics<arbitrary>], iteration_bounds = array<i64: 1, 1, 1>, scalar_prefetch = 0 : i64, scratch_operands = 1 : i64, tpu.core_type = #tpu.core_type<tc>, window_params = [{transform_indices = @transform_0, window_bounds = array<i64: 128, 128>}, {transform_indices = @transform_1, window_bounds = array<i64: 128, 512>}, {transform_indices = @transform_2, window_bounds = array<i64: 1, 512>}, {transform_indices = @transform_3, window_bounds = array<i64: 128, 512>}]} {
    %c0_i32 = arith.constant 0 : i32
    %0 = arith.cmpi eq, %arg2, %c0_i32 : i32
    %1 = arith.extui %0 : i1 to i32
    %c0_i32_0 = arith.constant 0 : i32
    %2 = arith.cmpi ne, %1, %c0_i32_0 : i32
    scf.if %2 {
      %cst_10 = arith.constant 0.000000e+00 : f32
      %12 = vector.broadcast %cst_10 : f32 to vector<128x512xf32>
      %c0_11 = arith.constant 0 : index
      %c0_12 = arith.constant 0 : index
      %13 = vector.load %arg7[%c0_11, %c0_12] : memref<128x512xf32, #tpu.memory_space<vmem>>, vector<128x512xf32>
      tpu.vector_store %arg7[%c0_11, %c0_12], %12 {strides = array<i32>} : memref<128x512xf32, #tpu.memory_space<vmem>>, vector<128x512xf32>,
    } else {
    }
    %c0 = arith.constant 0 : index
    %c0_1 = arith.constant 0 : index
    %3 = vector.load %arg7[%c0, %c0_1] : memref<128x512xf32, #tpu.memory_space<vmem>>, vector<128x512xf32>
    %c0_2 = arith.constant 0 : index
    %c0_3 = arith.constant 0 : index
    %4 = vector.load %arg3[%c0_2, %c0_3] : memref<128x128xbf16, #tpu.memory_space<vmem>>, vector<128x128xbf16>
    %c0_4 = arith.constant 0 : index
    %c0_5 = arith.constant 0 : index
    %5 = vector.load %arg4[%c0_4, %c0_5] : memref<128x512xbf16, #tpu.memory_space<vmem>>, vector<128x512xbf16>
    %cst = arith.constant dense<0.000000e+00> : vector<128x512xf32>
    %6 = tpu.matmul %4, %5, %cst {dimension_numbers = #tpu.dot_dimension_numbers<[1], [0], [0], [1], [0, 0, 1, 1], [], []>} : vector<128x128xbf16>, vector<128x512xbf16>, vector<128x512xf32> -> vector<128x512xf32>
    %7 = arith.addf %3, %6 : vector<128x512xf32>
    %c0_6 = arith.constant 0 : index
    %c0_7 = arith.constant 0 : index
    %8 = vector.load %arg7[%c0_6, %c0_7] : memref<128x512xf32, #tpu.memory_space<vmem>>, vector<128x512xf32>
    tpu.vector_store %arg7[%c0_6, %c0_7], %7 {strides = array<i32>} : memref<128x512xf32, #tpu.memory_space<vmem>>, vector<128x512xf32>,
    %c0_i32_8 = arith.constant 0 : i32
    %9 = arith.cmpi eq, %arg2, %c0_i32_8 : i32
    %10 = arith.extui %9 : i1 to i32
    %c0_i32_9 = arith.constant 0 : i32
    %11 = arith.cmpi ne, %10, %c0_i32_9 : i32
    scf.if %11 {
      %c0_10 = arith.constant 0 : index
      %c0_11 = arith.constant 0 : index
      %12 = vector.load %arg7[%c0_10, %c0_11] : memref<128x512xf32, #tpu.memory_space<vmem>>, vector<128x512xf32>
      %c0_12 = arith.constant 0 : index
      %c0_13 = arith.constant 0 : index
      %13 = vector.load %arg5[%c0_12, %c0_13] : memref<1x512xf32, #tpu.memory_space<vmem>>, vector<1x512xf32>
      %14 = vector.broadcast %13 : vector<1x512xf32> to vector<128x512xf32>
      %15 = arith.addf %12, %14 : vector<128x512xf32>
      %c0_14 = arith.constant 0 : index
      %c0_15 = arith.constant 0 : index
      %16 = vector.load %arg6[%c0_14, %c0_15] : memref<128x512xf32, #tpu.memory_space<vmem>>, vector<128x512xf32>
      tpu.vector_store %arg6[%c0_14, %c0_15], %15 {strides = array<i32>} : memref<128x512xf32, #tpu.memory_space<vmem>>, vector<128x512xf32>,
    } else {
    }
    return
  }
  func.func @transform_0(%arg0: i32, %arg1: i32, %arg2: i32) -> (i32, i32) {
    %c0_i32 = arith.constant 0 : i32
    return %arg0, %arg2 : i32, i32
  }
  func.func @transform_1(%arg0: i32, %arg1: i32, %arg2: i32) -> (i32, i32) {
    %c0_i32 = arith.constant 0 : i32
    return %arg2, %arg1 : i32, i32
  }
  func.func @transform_2(%arg0: i32, %arg1: i32, %arg2: i32) -> (i32, i32) {
    %c0_i32 = arith.constant 0 : i32
    %c0_i32_0 = arith.constant 0 : i32
    return %c0_i32, %arg1 : i32, i32
  }
  func.func @transform_3(%arg0: i32, %arg1: i32, %arg2: i32) -> (i32, i32) {
    %c0_i32 = arith.constant 0 : i32
    return %arg0, %arg1 : i32, i32
  }
}

</mosaic_0001>

<bundles_post_ra>
// kernel: tpu_custom_call.1
= control target key start
LH: loop header
LB: loop body
LE: loop exit
PB: predicated region body
PF: predicated region fallthrough
CT: control target
= control target key end

     0   :  { %8 = vsyncpa [#allocation4], 0  ;;  %s1356_s0 = inlined_call_operand.hbm [shape: bf16[128,128], index: 0, kind: input, shape index: {}]   ;;  %s1357_s1 = inlined_call_operand.hbm [shape: bf16[128,512], index: 1, kind: input, shape index: {}]   ;;  %s1358_s2 = inlined_call_operand.hbm [shape: f32[1,512], index: 2, kind: input, shape index: {}]   ;;  %s1359_s3 = inlined_call_operand.hbm [shape: f32[128,512], index: 3, kind: output, shape index: {}]  }
   0x1   :  { %9 = vsyncpa [#allocation7], 0 }
   0x2   :  { %10 = vsyncpa [#allocation5], 0  ;;  %s1225_s12 = smov [#allocation6]  }
   0x3   :  { %s28_s13 = sshll.u32 %s1225_s12, 4  ;;  %s29_s13 = int_to_ptr.vmem [resolvable:$true] %s28_s13 }
   0x4   :  { %s1147_s14 = scalar_lea.vmem %s29_s13, 4096  ;;  %p1152_p1 = scmp.lt.s32.totalorder %s29_s13, %s29_s13 }
   0x5   :  { %p1148_p0 = scmp.ne.s32.totalorder %s29_s13, %s1147_s14  ;;  %p1153_p2 = scmp.lt.s32.totalorder %s1147_s14, %s1147_s14 }
   0x7   :  { %p1154_p3 = por %p1153_p2, %p1152_p1 }
   0x9   :  { %p1155_p4 = pnand %p1154_p3, %p1148_p0 }
   0xb   :  { %1158 = shalt.err (!%p1155_p4)
}
   0xc   :  { %s1226_s15 = smov 256   ;;  %s1227_s16 = smov 16  }
   0xd   :  { %34 = dma.hbm_to_vmem [thread:$0]  %s1357_s1, 4096, %s29_s13, [#allocation7], %s1226_s15, %s1226_s15, %s1227_s16  }
   0xe   :  { %s1228_s19 = smov [#allocation3]  }
   0xf   :  { %s16_s20 = sshll.u32 %s1228_s19, 4  ;;  %s17_s20 = int_to_ptr.vmem [resolvable:$true] %s16_s20 }
  0x10   :  { %s1167_s21 = scalar_lea.vmem %s17_s20, 1024  ;;  %p1172_p6 = scmp.lt.s32.totalorder %s17_s20, %s17_s20 }
  0x11   :  { %p1168_p5 = scmp.ne.s32.totalorder %s17_s20, %s1167_s21  ;;  %p1173_p7 = scmp.lt.s32.totalorder %s1167_s21, %s1167_s21 }
  0x13   :  { %p1174_p8 = por %p1173_p7, %p1172_p6 }
  0x15   :  { %p1175_p9 = pnand %p1174_p8, %p1168_p5 }
  0x17   :  { %1178 = shalt.err (!%p1175_p9)
}
  0x18   :  { %s1229_s22 = smov 64   ;;  %s1230_s23 = smov 4  }
  0x19   :  { %22 = dma.hbm_to_vmem [thread:$0]  %s1356_s0, 1024, %s17_s20, [#allocation4], %s1229_s22, %s1229_s22, %s1230_s23  }
  0x1a   :  { %s1231_s26 = smov [#allocation8]  }
  0x1b   :  { %s41_s27 = sshll.u32 %s1231_s26, 4  ;;  %s42_s27 = int_to_ptr.vmem [resolvable:$true] %s41_s27 }
  0x1c   :  { %s1187_s1 = scalar_lea.vmem %s42_s27, 64  ;;  %p1192_p11 = scmp.lt.s32.totalorder %s42_s27, %s42_s27 }
  0x1d   :  { %p1188_p10 = scmp.ne.s32.totalorder %s42_s27, %s1187_s1  ;;  %p1193_p12 = scmp.lt.s32.totalorder %s1187_s1, %s1187_s1 }
  0x1f   :  { %p1194_p13 = por %p1193_p12, %p1192_p11 }
  0x21   :  { %p1195_p0 = pnand %p1194_p13, %p1188_p10 }
  0x23   :  { %1198 = shalt.err (!%p1195_p0)
}
  0x24   :  { %44 = dma.hbm_to_vmem [thread:$0]  %s1358_s2, 64, %s42_s27, [#allocation7]  }
  0x25   :  { %1219 = dma.done.wait [#allocation4], 1024  }
  0x26   :  { %1220 = vsyncadd [#allocation4], 4294966272 }
  0x27   :  { %1221 = dma.done.wait [#allocation7], 4160  }
  0x28   :  { %1222 = vsyncadd [#allocation7], 4294963136  ;;  %v1232_v0 = vmov 0   ;;  %v1083_v1 = vld [vmem:[#allocation6 + $0xe4] ss:$16 sps:$4 sm:$0xff]   ;;  %v1132_v34 = vld [vmem:[#allocation3 + $0x8] sm:$0xff]   ;;  %v866_v41 = vlaneseq }
  0x29   :  { %475 = vmatprep.mubr.bf16.mxu0 %v1232_v0  ;;  %588 = vmatprep.mubr.bf16.mxu1 %v1232_v0  ;;  %v1085_v2 = vld [vmem:[#allocation6 + $0xec] ss:$16 sps:$4 sm:$0xff]   ;;  %v1087_v3 = vld [vmem:[#allocation6 + $0xe0] ss:$16 sps:$4 sm:$0xff]   ;;  %v1088_v4 = vld [vmem:[#allocation6 + $0xe8] ss:$16 sps:$4 sm:$0xff]  }
  0x2a   :  { %443 = vmatprep.subr.bf16.mxu0 %v1083_v1  ;;  %556 = vmatprep.subr.bf16.mxu1 %v1085_v2  ;;  %v1089_v5 = vld [vmem:[#allocation6 + $0xc4] ss:$16 sps:$4 sm:$0xff]   ;;  %v1091_v6 = vld [vmem:[#allocation6 + $0xcc] ss:$16 sps:$4 sm:$0xff]   ;;  %v1093_v7 = vld [vmem:[#allocation6 + $0xc0] ss:$16 sps:$4 sm:$0xff]  }
  0x2b   :  { %444 = vmatpush1.bf16.msra.mxu0 %v1087_v3  ;;  %557 = vmatpush1.bf16.msra.mxu1 %v1088_v4  ;;  %v1094_v8 = vld [vmem:[#allocation6 + $0xc8] ss:$16 sps:$4 sm:$0xff]   ;;  %v1095_v9 = vld [vmem:[#allocation6 + $0xa4] ss:$16 sps:$4 sm:$0xff]   ;;  %v1097_v10 = vld [vmem:[#allocation6 + $0xac] ss:$16 sps:$4 sm:$0xff]  }
  0x2c   :  { %445 = vmatprep.subr.bf16.mxu0 %v1089_v5  ;;  %558 = vmatprep.subr.bf16.mxu1 %v1091_v6  ;;  %v1099_v11 = vld [vmem:[#allocation6 + $0xa0] ss:$16 sps:$4 sm:$0xff]   ;;  %v1100_v12 = vld [vmem:[#allocation6 + $0xa8] ss:$16 sps:$4 sm:$0xff]   ;;  %v1101_v13 = vld [vmem:[#allocation6 + $0x84] ss:$16 sps:$4 sm:$0xff]  }
  0x2d   :  { %v1103_v14 = vld [vmem:[#allocation6 + $0x8c] ss:$16 sps:$4 sm:$0xff]   ;;  %v1105_v15 = vld [vmem:[#allocation6 + $0x80] ss:$16 sps:$4 sm:$0xff]   ;;  %v1106_v16 = vld [vmem:[#allocation6 + $0x88] ss:$16 sps:$4 sm:$0xff]  }
  0x2e   :  { %v1107_v17 = vld [vmem:[#allocation6 + $0x64] ss:$16 sps:$4 sm:$0xff]   ;;  %v1109_v18 = vld [vmem:[#allocation6 + $0x6c] ss:$16 sps:$4 sm:$0xff]   ;;  %v1111_v19 = vld [vmem:[#allocation6 + $0x60] ss:$16 sps:$4 sm:$0xff]  }
  0x2f   :  { %446 = vmatpush1.bf16.msra.mxu0 %v1093_v7  ;;  %559 = vmatpush1.bf16.msra.mxu1 %v1094_v8  ;;  %v1112_v20 = vld [vmem:[#allocation6 + $0x68] ss:$16 sps:$4 sm:$0xff]   ;;  %v1113_v21 = vld [vmem:[#allocation6 + $0x44] ss:$16 sps:$4 sm:$0xff]   ;;  %v1115_v22 = vld [vmem:[#allocation6 + $0x4c] ss:$16 sps:$4 sm:$0xff]  }
  0x30   :  { %447 = vmatprep.subr.bf16.mxu0 %v1095_v9  ;;  %560 = vmatprep.subr.bf16.mxu1 %v1097_v10  ;;  %v1117_v23 = vld [vmem:[#allocation6 + $0x40] ss:$16 sps:$4 sm:$0xff]   ;;  %v1118_v24 = vld [vmem:[#allocation6 + $0x48] ss:$16 sps:$4 sm:$0xff]   ;;  %v1119_v25 = vld [vmem:[#allocation6 + $0x24] ss:$16 sps:$4 sm:$0xff]  }
  0x31   :  { %v1121_v26 = vld [vmem:[#allocation6 + $0x2c] ss:$16 sps:$4 sm:$0xff]   ;;  %v1123_v27 = vld [vmem:[#allocation6 + $0x20] ss:$16 sps:$4 sm:$0xff]   ;;  %v1124_v28 = vld [vmem:[#allocation6 + $0x28] ss:$16 sps:$4 sm:$0xff]  }
  0x32   :  { %v1125_v29 = vld [vmem:[#allocation6 + $0x4] ss:$16 sps:$4 sm:$0xff]   ;;  %v1127_v30 = vld [vmem:[#allocation6 + $0xc] ss:$16 sps:$4 sm:$0xff]   ;;  %v1129_v31 = vld [vmem:[#allocation6] ss:$16 sps:$4 sm:$0xff]  }
  0x33   :  { %448 = vmatpush1.bf16.msra.mxu0 %v1099_v11  ;;  %561 = vmatpush1.bf16.msra.mxu1 %v1100_v12  ;;  %v1130_v32 = vld [vmem:[#allocation6 + $0x8] ss:$16 sps:$4 sm:$0xff]   ;;  %v1131_v33 = vld [vmem:[#allocation3] sm:$0xff]   ;;  %v1133_v35 = vld [vmem:[#allocation3 + $0x10] sm:$0xff]   ;;  %v867_v42 = vshrl.u32 %v866_v41, 7  ;;  %s1233_s0 = smov [#allocation9]  }
  0x34   :  { %449 = vmatprep.subr.bf16.mxu0 %v1101_v13  ;;  %562 = vmatprep.subr.bf16.mxu1 %v1103_v14  ;;  %v1134_v36 = vld [vmem:[#allocation3 + $0x18] sm:$0xff]   ;;  %v1135_v37 = vld [vmem:[#allocation3 + $0x20] sm:$0xff]   ;;  %v1136_v38 = vld [vmem:[#allocation3 + $0x28] sm:$0xff]   ;;  %s1019_s2 = sshll.u32 %s1233_s0, 4  ;;  %s1020_s2 = int_to_ptr.vmem [resolvable:$true] %s1019_s2 }
  0x35   :  { %v1137_v39 = vld [vmem:[#allocation3 + $0x30] sm:$0xff]   ;;  %v1138_v40 = vld [vmem:[#allocation3 + $0x38] sm:$0xff]   ;;  %v868_v43 = vsub.s32 0, %v867_v42  ;;  %v876_v44 = vsub.s32 2, %v867_v42  ;;  %v864_v45 = vld [vmem:[#allocation8] sm:$0xf]  ;;  %p1204_p2 = scmp.lt.s32.totalorder %s1020_s2, %s1020_s2 }
  0x36   :  { %v872_v46 = vsub.s32 1, %v867_v42  ;;  %v880_v47 = vsub.s32 3, %v867_v42  ;;  %s1199_s30 = scalar_lea.vmem %s1020_s2, 8192 }
  0x37   :  { %450 = vmatpush1.bf16.msra.mxu0 %v1105_v15  ;;  %563 = vmatpush1.bf16.msra.mxu1 %v1106_v16  ;;  %v1281_v48 = vrot.slane %v864_v45, %v868_v43  ;;  %v1283_v49 = vrot.slane %v864_v45, %v876_v44  ;;  %p1200_p1 = scmp.ne.s32.totalorder %s1020_s2, %s1199_s30  ;;  %p1205_p3 = scmp.lt.s32.totalorder %s1199_s30, %s1199_s30 }
  0x38   :  { %451 = vmatprep.subr.bf16.mxu0 %v1107_v17  ;;  %564 = vmatprep.subr.bf16.mxu1 %v1109_v18  ;;  %v1285_v50 = vrot.slane %v864_v45, %v872_v46  ;;  %v1287_v51 = vrot.slane %v864_v45, %v880_v47 }
  0x39   :  { %p1206_p4 = por %p1205_p3, %p1204_p2 }
  0x3b   :  { %452 = vmatpush1.bf16.msra.mxu0 %v1111_v19  ;;  %565 = vmatpush1.bf16.msra.mxu1 %v1112_v20  ;;  %p1207_p5 = pnand %p1206_p4, %p1200_p1 }
  0x3c   :  { %453 = vmatprep.subr.bf16.mxu0 %v1113_v21  ;;  %566 = vmatprep.subr.bf16.mxu1 %v1115_v22 }
  0x3f   :  { %454 = vmatpush1.bf16.msra.mxu0 %v1117_v23  ;;  %567 = vmatpush1.bf16.msra.mxu1 %v1118_v24 }
  0x40   :  { %455 = vmatprep.subr.bf16.mxu0 %v1119_v25  ;;  %568 = vmatprep.subr.bf16.mxu1 %v1121_v26 }
  0x43   :  { %456 = vmatpush1.bf16.msra.mxu0 %v1123_v27  ;;  %569 = vmatpush1.bf16.msra.mxu1 %v1124_v28 }
  0x44   :  { %457 = vmatprep.subr.bf16.mxu0 %v1125_v29  ;;  %570 = vmatprep.subr.bf16.mxu1 %v1127_v30 }
  0x47   :  { %458 = vmatpush1.bf16.msra.mxu0 %v1129_v31  ;;  %571 = vmatpush1.bf16.msra.mxu1 %v1130_v32 }
  0x4a   :  { %476 = vmatmul.mubr.bf16.vlgmr.msra.gmra.mxu0 %v1131_v33  ;;  %589 = vmatmul.mubr.bf16.vlgmr.msra.gmra.mxu1 %v1131_v33 }
  0x4b   :  { %485 = vmatprep.mubr.bf16.mxu0 %v1232_v0  ;;  %598 = vmatprep.mubr.bf16.mxu1 %v1232_v0 }
  0x52   :  { %486 = vmatmul.mubr.bf16.gmra.mxu0 %v1132_v34  ;;  %599 = vmatmul.mubr.bf16.gmra.mxu1 %v1132_v34 }
  0x53   :  { %495 = vmatprep.mubr.bf16.mxu0 %v1232_v0  ;;  %608 = vmatprep.mubr.bf16.mxu1 %v1232_v0 }
  0x5a   :  { %496 = vmatmul.mubr.bf16.gmra.mxu0 %v1133_v35  ;;  %609 = vmatmul.mubr.bf16.gmra.mxu1 %v1133_v35 }
  0x5b   :  { %505 = vmatprep.mubr.bf16.mxu0 %v1232_v0  ;;  %618 = vmatprep.mubr.bf16.mxu1 %v1232_v0 }
  0x62   :  { %506 = vmatmul.mubr.bf16.gmra.mxu0 %v1134_v36  ;;  %619 = vmatmul.mubr.bf16.gmra.mxu1 %v1134_v36 }
  0x63   :  { %515 = vmatprep.mubr.bf16.mxu0 %v1232_v0  ;;  %628 = vmatprep.mubr.bf16.mxu1 %v1232_v0 }
  0x6a   :  { %516 = vmatmul.mubr.bf16.gmra.mxu0 %v1135_v37  ;;  %629 = vmatmul.mubr.bf16.gmra.mxu1 %v1135_v37 }
  0x6b   :  { %525 = vmatprep.mubr.bf16.mxu0 %v1232_v0  ;;  %638 = vmatprep.mubr.bf16.mxu1 %v1232_v0 }
  0x72   :  { %526 = vmatmul.mubr.bf16.gmra.mxu0 %v1136_v38  ;;  %639 = vmatmul.mubr.bf16.gmra.mxu1 %v1136_v38 }
  0x73   :  { %535 = vmatprep.mubr.bf16.mxu0 %v1232_v0  ;;  %648 = vmatprep.mubr.bf16.mxu1 %v1232_v0 }
  0x7a   :  { %536 = vmatmul.mubr.bf16.gmra.mxu0 %v1137_v39  ;;  %649 = vmatmul.mubr.bf16.gmra.mxu1 %v1137_v39 }
  0x7b   :  { %545 = vmatprep.mubr.bf16.mxu0 %v1232_v0  ;;  %658 = vmatprep.mubr.bf16.mxu1 %v1232_v0 }
  0x82   :  { %546 = vmatmul.mubr.bf16.gmra.mxu0 %v1138_v40  ;;  %659 = vmatmul.mubr.bf16.gmra.mxu1 %v1138_v40 }
 0x10a   :  { %v477_v52 = vpop.f32.mrf.mxu0  ;;  %v590_v53 = vpop.f32.mrf.mxu1 }
 0x10b   :  { %v886_v54 = vadd.f32 %v1281_v48, %v477_v52  ;;  %v888_v55 = vadd.f32 %v1283_v49, %v590_v53 }
 0x10c   :  { %v479_v56 = vpop.f32.mrf.mxu0  ;;  %v592_v57 = vpop.f32.mrf.mxu1 }
 0x10d   :  { %950 = vst [vmem:[#allocation9] sm:$0xff] %v886_v54  ;;  %952 = vst [vmem:[#allocation9 + $0x10] sm:$0xff] %v888_v55  ;;  %v887_v58 = vadd.f32 %v1285_v50, %v479_v56  ;;  %v889_v59 = vadd.f32 %v1287_v51, %v592_v57 }
 0x10e   :  { %v481_v60 = vpop.f32.mrf.mxu0  ;;  %v594_v61 = vpop.f32.mrf.mxu1 }
 0x10f   :  { %951 = vst [vmem:[#allocation9 + $0x8] sm:$0xff] %v887_v58  ;;  %953 = vst [vmem:[#allocation9 + $0x18] sm:$0xff] %v889_v59  ;;  %v890_v62 = vadd.f32 %v1281_v48, %v481_v60  ;;  %v892_v63 = vadd.f32 %v1283_v49, %v594_v61 }
 0x110   :  { %v483_v0 = vpop.f32.mrf.mxu0  ;;  %v596_v1 = vpop.f32.mrf.mxu1 }
 0x111   :  { %954 = vst [vmem:[#allocation9 + $0x20] sm:$0xff] %v890_v62  ;;  %956 = vst [vmem:[#allocation9 + $0x30] sm:$0xff] %v892_v63  ;;  %v891_v2 = vadd.f32 %v1285_v50, %v483_v0  ;;  %v893_v3 = vadd.f32 %v1287_v51, %v596_v1 }
 0x112   :  { %v487_v4 = vpop.f32.mrf.mxu0  ;;  %v600_v5 = vpop.f32.mrf.mxu1 }
 0x113   :  { %955 = vst [vmem:[#allocation9 + $0x28] sm:$0xff] %v891_v2  ;;  %957 = vst [vmem:[#allocation9 + $0x38] sm:$0xff] %v893_v3  ;;  %v894_v6 = vadd.f32 %v1281_v48, %v487_v4  ;;  %v896_v7 = vadd.f32 %v1283_v49, %v600_v5 }
 0x114   :  { %v489_v8 = vpop.f32.mrf.mxu0  ;;  %v602_v9 = vpop.f32.mrf.mxu1 }
 0x115   :  { %958 = vst [vmem:[#allocation9 + $0x40] sm:$0xff] %v894_v6  ;;  %960 = vst [vmem:[#allocation9 + $0x50] sm:$0xff] %v896_v7  ;;  %v895_v10 = vadd.f32 %v1285_v50, %v489_v8  ;;  %v897_v11 = vadd.f32 %v1287_v51, %v602_v9 }
 0x116   :  { %v491_v12 = vpop.f32.mrf.mxu0  ;;  %v604_v13 = vpop.f32.mrf.mxu1 }
 0x117   :  { %959 = vst [vmem:[#allocation9 + $0x48] sm:$0xff] %v895_v10  ;;  %961 = vst [vmem:[#allocation9 + $0x58] sm:$0xff] %v897_v11  ;;  %v898_v14 = vadd.f32 %v1281_v48, %v491_v12  ;;  %v900_v15 = vadd.f32 %v1283_v49, %v604_v13 }
 0x118   :  { %v493_v16 = vpop.f32.mrf.mxu0  ;;  %v606_v17 = vpop.f32.mrf.mxu1 }
 0x119   :  { %962 = vst [vmem:[#allocation9 + $0x60] sm:$0xff] %v898_v14  ;;  %964 = vst [vmem:[#allocation9 + $0x70] sm:$0xff] %v900_v15  ;;  %v899_v18 = vadd.f32 %v1285_v50, %v493_v16  ;;  %v901_v19 = vadd.f32 %v1287_v51, %v606_v17 }
 0x11a   :  { %v497_v20 = vpop.f32.mrf.mxu0  ;;  %v610_v21 = vpop.f32.mrf.mxu1 }
 0x11b   :  { %963 = vst [vmem:[#allocation9 + $0x68] sm:$0xff] %v899_v18  ;;  %965 = vst [vmem:[#allocation9 + $0x78] sm:$0xff] %v901_v19  ;;  %v902_v22 = vadd.f32 %v1281_v48, %v497_v20  ;;  %v904_v23 = vadd.f32 %v1283_v49, %v610_v21 }
 0x11c   :  { %v499_v24 = vpop.f32.mrf.mxu0  ;;  %v612_v25 = vpop.f32.mrf.mxu1 }
 0x11d   :  { %966 = vst [vmem:[#allocation9 + $0x80] sm:$0xff] %v902_v22  ;;  %968 = vst [vmem:[#allocation9 + $0x90] sm:$0xff] %v904_v23  ;;  %v903_v26 = vadd.f32 %v1285_v50, %v499_v24  ;;  %v905_v27 = vadd.f32 %v1287_v51, %v612_v25 }
 0x11e   :  { %v501_v28 = vpop.f32.mrf.mxu0  ;;  %v614_v29 = vpop.f32.mrf.mxu1 }
 0x11f   :  { %967 = vst [vmem:[#allocation9 + $0x88] sm:$0xff] %v903_v26  ;;  %969 = vst [vmem:[#allocation9 + $0x98] sm:$0xff] %v905_v27  ;;  %v906_v30 = vadd.f32 %v1281_v48, %v501_v28  ;;  %v908_v31 = vadd.f32 %v1283_v49, %v614_v29 }
 0x120   :  { %v503_v32 = vpop.f32.mrf.mxu0  ;;  %v616_v33 = vpop.f32.mrf.mxu1 }
 0x121   :  { %970 = vst [vmem:[#allocation9 + $0xa0] sm:$0xff] %v906_v30  ;;  %972 = vst [vmem:[#allocation9 + $0xb0] sm:$0xff] %v908_v31  ;;  %v907_v34 = vadd.f32 %v1285_v50, %v503_v32  ;;  %v909_v35 = vadd.f32 %v1287_v51, %v616_v33 }
 0x122   :  { %v507_v36 = vpop.f32.mrf.mxu0  ;;  %v620_v37 = vpop.f32.mrf.mxu1 }
 0x123   :  { %971 = vst [vmem:[#allocation9 + $0xa8] sm:$0xff] %v907_v34  ;;  %973 = vst [vmem:[#allocation9 + $0xb8] sm:$0xff] %v909_v35  ;;  %v910_v38 = vadd.f32 %v1281_v48, %v507_v36  ;;  %v912_v39 = vadd.f32 %v1283_v49, %v620_v37 }
 0x124   :  { %v509_v40 = vpop.f32.mrf.mxu0  ;;  %v622_v41 = vpop.f32.mrf.mxu1 }
 0x125   :  { %974 = vst [vmem:[#allocation9 + $0xc0] sm:$0xff] %v910_v38  ;;  %976 = vst [vmem:[#allocation9 + $0xd0] sm:$0xff] %v912_v39  ;;  %v911_v42 = vadd.f32 %v1285_v50, %v509_v40  ;;  %v913_v43 = vadd.f32 %v1287_v51, %v622_v41 }
 0x126   :  { %v511_v44 = vpop.f32.mrf.mxu0  ;;  %v624_v45 = vpop.f32.mrf.mxu1 }
 0x127   :  { %975 = vst [vmem:[#allocation9 + $0xc8] sm:$0xff] %v911_v42  ;;  %977 = vst [vmem:[#allocation9 + $0xd8] sm:$0xff] %v913_v43  ;;  %v914_v46 = vadd.f32 %v1281_v48, %v511_v44  ;;  %v916_v47 = vadd.f32 %v1283_v49, %v624_v45 }
 0x128   :  { %v513_v52 = vpop.f32.mrf.mxu0  ;;  %v626_v53 = vpop.f32.mrf.mxu1 }
 0x129   :  { %978 = vst [vmem:[#allocation9 + $0xe0] sm:$0xff] %v914_v46  ;;  %980 = vst [vmem:[#allocation9 + $0xf0] sm:$0xff] %v916_v47  ;;  %v915_v54 = vadd.f32 %v1285_v50, %v513_v52  ;;  %v917_v55 = vadd.f32 %v1287_v51, %v626_v53 }
 0x12a   :  { %v517_v56 = vpop.f32.mrf.mxu0  ;;  %v630_v57 = vpop.f32.mrf.mxu1 }
 0x12b   :  { %979 = vst [vmem:[#allocation9 + $0xe8] sm:$0xff] %v915_v54  ;;  %981 = vst [vmem:[#allocation9 + $0xf8] sm:$0xff] %v917_v55  ;;  %v918_v58 = vadd.f32 %v1281_v48, %v517_v56  ;;  %v920_v59 = vadd.f32 %v1283_v49, %v630_v57 }
 0x12c   :  { %v519_v60 = vpop.f32.mrf.mxu0  ;;  %v632_v61 = vpop.f32.mrf.mxu1 }
 0x12d   :  { %982 = vst [vmem:[#allocation9 + $0x100] sm:$0xff] %v918_v58  ;;  %984 = vst [vmem:[#allocation9 + $0x110] sm:$0xff] %v920_v59  ;;  %v919_v62 = vadd.f32 %v1285_v50, %v519_v60  ;;  %v921_v63 = vadd.f32 %v1287_v51, %v632_v61 }
 0x12e   :  { %v521_v0 = vpop.f32.mrf.mxu0  ;;  %v634_v1 = vpop.f32.mrf.mxu1 }
 0x12f   :  { %983 = vst [vmem:[#allocation9 + $0x108] sm:$0xff] %v919_v62  ;;  %985 = vst [vmem:[#allocation9 + $0x118] sm:$0xff] %v921_v63  ;;  %v922_v2 = vadd.f32 %v1281_v48, %v521_v0  ;;  %v924_v3 = vadd.f32 %v1283_v49, %v634_v1 }
 0x130   :  { %v523_v4 = vpop.f32.mrf.mxu0  ;;  %v636_v5 = vpop.f32.mrf.mxu1 }
 0x131   :  { %986 = vst [vmem:[#allocation9 + $0x120] sm:$0xff] %v922_v2  ;;  %988 = vst [vmem:[#allocation9 + $0x130] sm:$0xff] %v924_v3  ;;  %v923_v6 = vadd.f32 %v1285_v50, %v523_v4  ;;  %v925_v7 = vadd.f32 %v1287_v51, %v636_v5 }
 0x132   :  { %v527_v8 = vpop.f32.mrf.mxu0  ;;  %v640_v9 = vpop.f32.mrf.mxu1 }
 0x133   :  { %987 = vst [vmem:[#allocation9 + $0x128] sm:$0xff] %v923_v6  ;;  %989 = vst [vmem:[#allocation9 + $0x138] sm:$0xff] %v925_v7  ;;  %v926_v10 = vadd.f32 %v1281_v48, %v527_v8  ;;  %v928_v11 = vadd.f32 %v1283_v49, %v640_v9 }
 0x134   :  { %v529_v12 = vpop.f32.mrf.mxu0  ;;  %v642_v13 = vpop.f32.mrf.mxu1 }
 0x135   :  { %990 = vst [vmem:[#allocation9 + $0x140] sm:$0xff] %v926_v10  ;;  %992 = vst [vmem:[#allocation9 + $0x150] sm:$0xff] %v928_v11  ;;  %v927_v14 = vadd.f32 %v1285_v50, %v529_v12  ;;  %v929_v15 = vadd.f32 %v1287_v51, %v642_v13 }
 0x136   :  { %v531_v16 = vpop.f32.mrf.mxu0  ;;  %v644_v17 = vpop.f32.mrf.mxu1 }
 0x137   :  { %991 = vst [vmem:[#allocation9 + $0x148] sm:$0xff] %v927_v14  ;;  %993 = vst [vmem:[#allocation9 + $0x158] sm:$0xff] %v929_v15  ;;  %v930_v18 = vadd.f32 %v1281_v48, %v531_v16  ;;  %v932_v19 = vadd.f32 %v1283_v49, %v644_v17 }
 0x138   :  { %v533_v20 = vpop.f32.mrf.mxu0  ;;  %v646_v21 = vpop.f32.mrf.mxu1 }
 0x139   :  { %994 = vst [vmem:[#allocation9 + $0x160] sm:$0xff] %v930_v18  ;;  %996 = vst [vmem:[#allocation9 + $0x170] sm:$0xff] %v932_v19  ;;  %v931_v22 = vadd.f32 %v1285_v50, %v533_v20  ;;  %v933_v23 = vadd.f32 %v1287_v51, %v646_v21 }
 0x13a   :  { %v537_v24 = vpop.f32.mrf.mxu0  ;;  %v650_v25 = vpop.f32.mrf.mxu1 }
 0x13b   :  { %995 = vst [vmem:[#allocation9 + $0x168] sm:$0xff] %v931_v22  ;;  %997 = vst [vmem:[#allocation9 + $0x178] sm:$0xff] %v933_v23  ;;  %v934_v26 = vadd.f32 %v1281_v48, %v537_v24  ;;  %v936_v27 = vadd.f32 %v1283_v49, %v650_v25 }
 0x13c   :  { %v539_v28 = vpop.f32.mrf.mxu0  ;;  %v652_v29 = vpop.f32.mrf.mxu1 }
 0x13d   :  { %998 = vst [vmem:[#allocation9 + $0x180] sm:$0xff] %v934_v26  ;;  %1000 = vst [vmem:[#allocation9 + $0x190] sm:$0xff] %v936_v27  ;;  %v935_v30 = vadd.f32 %v1285_v50, %v539_v28  ;;  %v937_v31 = vadd.f32 %v1287_v51, %v652_v29 }
 0x13e   :  { %v541_v32 = vpop.f32.mrf.mxu0  ;;  %v654_v33 = vpop.f32.mrf.mxu1 }
 0x13f   :  { %999 = vst [vmem:[#allocation9 + $0x188] sm:$0xff] %v935_v30  ;;  %1001 = vst [vmem:[#allocation9 + $0x198] sm:$0xff] %v937_v31  ;;  %v938_v34 = vadd.f32 %v1281_v48, %v541_v32  ;;  %v940_v35 = vadd.f32 %v1283_v49, %v654_v33 }
 0x140   :  { %v543_v36 = vpop.f32.mrf.mxu0  ;;  %v656_v37 = vpop.f32.mrf.mxu1 }
 0x141   :  { %1002 = vst [vmem:[#allocation9 + $0x1a0] sm:$0xff] %v938_v34  ;;  %1004 = vst [vmem:[#allocation9 + $0x1b0] sm:$0xff] %v940_v35  ;;  %v939_v38 = vadd.f32 %v1285_v50, %v543_v36  ;;  %v941_v39 = vadd.f32 %v1287_v51, %v656_v37 }
 0x142   :  { %v547_v40 = vpop.f32.mrf.mxu0  ;;  %v660_v41 = vpop.f32.mrf.mxu1 }
 0x143   :  { %1003 = vst [vmem:[#allocation9 + $0x1a8] sm:$0xff] %v939_v38  ;;  %1005 = vst [vmem:[#allocation9 + $0x1b8] sm:$0xff] %v941_v39  ;;  %v942_v42 = vadd.f32 %v1281_v48, %v547_v40  ;;  %v944_v43 = vadd.f32 %v1283_v49, %v660_v41 }
 0x144   :  { %v549_v44 = vpop.f32.mrf.mxu0  ;;  %v662_v45 = vpop.f32.mrf.mxu1 }
 0x145   :  { %1006 = vst [vmem:[#allocation9 + $0x1c0] sm:$0xff] %v942_v42  ;;  %1008 = vst [vmem:[#allocation9 + $0x1d0] sm:$0xff] %v944_v43  ;;  %v943_v46 = vadd.f32 %v1285_v50, %v549_v44  ;;  %v945_v47 = vadd.f32 %v1287_v51, %v662_v45 }
 0x146   :  { %v551_v52 = vpop.f32.mrf.mxu0  ;;  %v664_v53 = vpop.f32.mrf.mxu1 }
 0x147   :  { %1007 = vst [vmem:[#allocation9 + $0x1c8] sm:$0xff] %v943_v46  ;;  %1009 = vst [vmem:[#allocation9 + $0x1d8] sm:$0xff] %v945_v47  ;;  %v946_v54 = vadd.f32 %v1281_v48, %v551_v52  ;;  %v948_v55 = vadd.f32 %v1283_v49, %v664_v53 }
 0x148   :  { %v553_v56 = vpop.f32.mrf.mxu0  ;;  %v666_v57 = vpop.f32.mrf.mxu1 }
 0x149   :  { %1010 = vst [vmem:[#allocation9 + $0x1e0] sm:$0xff] %v946_v54  ;;  %1012 = vst [vmem:[#allocation9 + $0x1f0] sm:$0xff] %v948_v55  ;;  %v947_v58 = vadd.f32 %v1285_v50, %v553_v56  ;;  %v949_v59 = vadd.f32 %v1287_v51, %v666_v57 }
 0x14b   :  { %1011 = vst [vmem:[#allocation9 + $0x1e8] sm:$0xff] %v947_v58  ;;  %1013 = vst [vmem:[#allocation9 + $0x1f8] sm:$0xff] %v949_v59 }
 0x14c   :  { %1210 = shalt.err (!%p1207_p5)
}
 0x14d   :  { %s1234_s4 = smov 512   ;;  %s1235_s5 = smov 32  }
 0x14e   :  { %1025 = dma.vmem_to_hbm [thread:$0]  %s1020_s2, 8192, %s1359_s3, [#allocation5], %s1234_s4, %s1234_s4, %s1235_s5  }
 0x14f   :  { %1223 = dma.done.wait [#allocation5], 8192  }
 0x150   :  { %1224 = vsyncadd [#allocation5], 4294959104 }
 0x151   :  { %1029 = vsyncpa [#allocation4], 1 }
 0x152   :  { %1030 = vsyncpa [#allocation7], 1 }
 0x153   :  { %1031 = vsyncpa [#allocation5], 1 }

</bundles_post_ra>
